<compile_context>
chip_gen: v5e
topology: v5e:2x2
jax: 0.10.0
libtpu: 0.0.40
codegen_flags: <defaults>
</compile_context>

<pallas_src>
import jax
import jax.numpy as jnp
from jax.experimental import pallas as pl
from jax.experimental.pallas import tpu as pltpu


# ----------------------------------------------------------------------------
# Pallas kernel: tiled warp matmul (MXU) + clamp + attenuation blend (VPU)
# grid = (B/bt, HW/tn, HW/tk); k is the contraction over input pixels.
# ----------------------------------------------------------------------------
def _blender_kernel(x_ref, xp_ref, w_ref, a_ref, o_ref, acc_ref):
    # x_ref  : (bt, C, tn)  original image tile (output-pixel axis), x dtype
    # xp_ref : (bt, C, tk)  permuted image tile (input-pixel axis),  bf16
    # w_ref  : (bt, tk, tn) warp weights  w[b, in_pix, out_pix],     bf16
    # a_ref  : (1,)         attenuation scalar in SMEM
    # o_ref  : (bt, C, tn)  blended output tile
    # acc_ref: (bt, C, tn)  f32 accumulator (scratch, resident over k)
    k = pl.program_id(2)

    @pl.when(k == 0)
    def _():
        acc_ref[...] = jnp.zeros_like(acc_ref)

    bt = xp_ref.shape[0]
    for b in range(bt):  # static unroll; each sample has its own warp matrix
        acc_ref[b] += jnp.dot(xp_ref[b], w_ref[b],
                              preferred_element_type=jnp.float32)

    @pl.when(k == pl.num_programs(2) - 1)
    def _():
        atten = a_ref[0]
        warped = jnp.clip(acc_ref[...], 0.0, 1.0)
        o_ref[...] = ((1.0 - atten) * x_ref[...].astype(jnp.float32)
                      + atten * warped).astype(o_ref.dtype)


def _pick_tile(hw, cap=512):
    for t in (cap, 256, 128):
        if t <= hw and hw % t == 0:
            return t
    return hw  # small / odd spatial sizes: single full-axis block


def _pick_batch_block(b, tk, tn):
    # Amortize per-grid-step overhead at small HW while keeping the
    # double-buffered bf16 W block comfortably inside VMEM on all gens.
    for cand in (8, 4, 2):
        if b % cand == 0 and cand * tk * tn * 2 <= 8 * 1024 * 1024:
            return cand
    return 1


def _pallas_blend(x_flat, xp_bf16, warp_t_bf16, attenuation):
    """x_flat (B,C,HW); xp_bf16 (B,C,HW) bf16; warp_t_bf16 (B,HW,HW) bf16."""
    B, C, HW = x_flat.shape
    tn = _pick_tile(HW)
    tk = _pick_tile(HW)
    bt = _pick_batch_block(B, tk, tn)
    grid = (B // bt, HW // tn, HW // tk)

    atten = jnp.asarray([attenuation], dtype=jnp.float32)

    def _bytes(a):
        return a.size * a.dtype.itemsize

    cost = pl.CostEstimate(
        flops=2 * B * C * HW * HW,
        transcendentals=0,
        bytes_accessed=int(_bytes(warp_t_bf16) + _bytes(x_flat)
                           + _bytes(xp_bf16) + _bytes(x_flat)),
    )

    return pl.pallas_call(
        _blender_kernel,
        out_shape=jax.ShapeDtypeStruct((B, C, HW), x_flat.dtype),
        grid=grid,
        in_specs=[
            pl.BlockSpec((bt, C, tn), lambda b, n, k: (b, 0, n)),    # x
            pl.BlockSpec((bt, C, tk), lambda b, n, k: (b, 0, k)),    # x_perm
            pl.BlockSpec((bt, tk, tn), lambda b, n, k: (b, k, n)),   # W (pre-T)
            pl.BlockSpec(memory_space=pltpu.MemorySpace.SMEM),       # attenuation
        ],
        out_specs=pl.BlockSpec((bt, C, tn), lambda b, n, k: (b, 0, n)),
        scratch_shapes=[pltpu.VMEM((bt, C, tn), jnp.float32)],
        compiler_params=pltpu.CompilerParams(
            dimension_semantics=("parallel", "parallel", "arbitrary"),
            vmem_limit_bytes=32 * 1024 * 1024,
        ),
        cost_estimate=cost,
    )(x_flat, xp_bf16, warp_t_bf16, atten)


# ----------------------------------------------------------------------------
# Glue: per-sample bilinear warp matrix for translate-then-rotate, built
# TRANSPOSED (w[in_pix, out_pix]) so the kernel is a plain xp @ W.
# (kornia-style: rotation about image center, degrees, zeros padding,
#  pixel-center / align_corners=True convention)
# ----------------------------------------------------------------------------
def _build_warp_matrix_t(angle_deg, shift, H, W):
    cx = (W - 1) / 2.0
    cy = (H - 1) / 2.0
    a = jnp.deg2rad(angle_deg)
    ca, sa = jnp.cos(a), jnp.sin(a)

    vv, uu = jnp.meshgrid(jnp.arange(H, dtype=jnp.float32),
                          jnp.arange(W, dtype=jnp.float32), indexing="ij")
    du = uu - cx
    dv = vv - cy
    # inverse map of rotate(translate(.)) : src = R^{-1}(p - c) + c - t
    src_x = ca * du - sa * dv + cx - shift[0]
    src_y = sa * du + ca * dv + cy - shift[1]

    x0 = jnp.floor(src_x)
    y0 = jnp.floor(src_y)
    x1 = x0 + 1.0
    y1 = y0 + 1.0
    wx1 = src_x - x0
    wx0 = 1.0 - wx1
    wy1 = src_y - y0
    wy0 = 1.0 - wy1

    HW = H * W
    out_idx = (vv * W + uu).astype(jnp.int32).reshape(-1)
    mat = jnp.zeros((HW, HW), jnp.float32)
    for xs, ys, wgt in ((x0, y0, wx0 * wy0), (x1, y0, wx1 * wy0),
                        (x0, y1, wx0 * wy1), (x1, y1, wx1 * wy1)):
        valid = (xs >= 0) & (xs <= W - 1) & (ys >= 0) & (ys <= H - 1)
        in_idx = (jnp.clip(ys, 0, H - 1) * W
                  + jnp.clip(xs, 0, W - 1)).astype(jnp.int32).reshape(-1)
        wv = jnp.where(valid, wgt, 0.0).reshape(-1)
        mat = mat.at[in_idx, out_idx].add(wv)   # transposed scatter
    return mat  # (HW_in, HW_out)


# ----------------------------------------------------------------------------
# ClassBlender forward
# ----------------------------------------------------------------------------
def class_blender_forward(x, attenuation, key, training=True):
    """x: (B, C, H, W) float32 in [0, 1]."""
    if not training:
        return x, None

    B, C, H, W = x.shape
    k_perm, k_ang, k_shift = jax.random.split(key, 3)

    perm = jax.random.permutation(k_perm, B)
    angles = 180.0 * (2.0 * jax.random.uniform(k_ang, (B,)) - 1.0)
    shifts = 4.0 * (2.0 * jax.random.uniform(k_shift, (B, 2)) - 1.0)

    x_perm = x[perm]
    warp_t = jax.vmap(_build_warp_matrix_t, in_axes=(0, 0, None, None))(
        angles, shifts, H, W).astype(jnp.bfloat16)           # (B, HW, HW)

    x_flat = x.reshape(B, C, H * W)
    xp_bf16 = x_perm.reshape(B, C, H * W).astype(jnp.bfloat16)

    out_flat = _pallas_blend(x_flat, xp_bf16, warp_t, attenuation)
    return out_flat.reshape(B, C, H, W), (x_flat, xp_bf16, warp_t)


# ----------------------------------------------------------------------------
# Main
# ----------------------------------------------------------------------------
if __name__ == "__main__":
    key = jax.random.PRNGKey(0)
    k_x, k_fwd = jax.random.split(key)

    B, C, H, W = 2, 4, 16, 16
    attenuation = 0.3

    x = jax.random.uniform(k_x, (B, C, H, W), dtype=jnp.float32)

    out, (x_flat, xp_bf16, warp_t_bf16) = class_blender_forward(
        x, attenuation, k_fwd, training=True)
    out = jax.block_until_ready(out)

    # Pure-JAX reference of the in-kernel hot path (same bf16 operands).
    warped_ref = jnp.clip(
        jnp.einsum("bck,bkn->bcn",
                   xp_bf16.astype(jnp.float32),
                   warp_t_bf16.astype(jnp.float32)), 0.0, 1.0)
    ref = ((1.0 - attenuation) * x_flat + attenuation * warped_ref
           ).reshape(B, C, H, W)

    assert out.shape == (B, C, H, W)
    assert jnp.allclose(out, ref, atol=2e-3), "mismatch vs JAX reference"

    print("KERNEL_OK")
</pallas_src>

<mosaic_0001>
module attributes {stable_mosaic.version = 11 : i64} {
  func.func @_blender_kernel(%arg0: i32, %arg1: i32, %arg2: i32, %arg3: memref<2x4x256xf32, #tpu.memory_space<vmem>>, %arg4: memref<2x4x256xbf16, #tpu.memory_space<vmem>>, %arg5: memref<2x256x256xbf16, #tpu.memory_space<vmem>>, %arg6: memref<1xf32, #tpu.memory_space<smem>>, %arg7: memref<2x4x256xf32, #tpu.memory_space<vmem>>, %arg8: memref<2x4x256xf32, #tpu.memory_space<vmem>>) attributes {dimension_semantics = [#tpu.dimension_semantics<parallel>, #tpu.dimension_semantics<parallel>, #tpu.dimension_semantics<arbitrary>], iteration_bounds = array<i64: 1, 1, 1>, scalar_prefetch = 0 : i64, scratch_operands = 1 : i64, tpu.core_type = #tpu.core_type<tc>, window_params = [{transform_indices = @transform_0, window_bounds = array<i64: 2, 4, 256>}, {transform_indices = @transform_1, window_bounds = array<i64: 2, 4, 256>}, {transform_indices = @transform_2, window_bounds = array<i64: 2, 256, 256>}, {transform_indices = @transform_3, window_bounds = array<i64: 1>}, {transform_indices = @transform_4, window_bounds = array<i64: 2, 4, 256>}]} {
    %c0_i32 = arith.constant 0 : i32
    %0 = arith.cmpi eq, %arg2, %c0_i32 : i32
    %1 = arith.extui %0 : i1 to i32
    %c0_i32_0 = arith.constant 0 : i32
    %2 = arith.cmpi ne, %1, %c0_i32_0 : i32
    scf.if %2 {
      %cst_26 = arith.constant 0.000000e+00 : f32
      %28 = vector.broadcast %cst_26 : f32 to vector<2x4x256xf32>
      %c0_27 = arith.constant 0 : index
      %c0_28 = arith.constant 0 : index
      %c0_29 = arith.constant 0 : index
      %29 = vector.load %arg8[%c0_27, %c0_28, %c0_29] : memref<2x4x256xf32, #tpu.memory_space<vmem>>, vector<2x4x256xf32>
      tpu.vector_store %arg8[%c0_27, %c0_28, %c0_29], %28 {strides = array<i32>} : memref<2x4x256xf32, #tpu.memory_space<vmem>>, vector<2x4x256xf32>,
    } else {
    }
    %c0 = arith.constant 0 : index
    %c0_1 = arith.constant 0 : index
    %c0_2 = arith.constant 0 : index
    %3 = vector.load %arg8[%c0, %c0_1, %c0_2] : memref<2x4x256xf32, #tpu.memory_space<vmem>>, vector<1x4x256xf32>
    %4 = vector.shape_cast %3 : vector<1x4x256xf32> to vector<4x256xf32>
    %c0_3 = arith.constant 0 : index
    %c0_4 = arith.constant 0 : index
    %c0_5 = arith.constant 0 : index
    %5 = vector.load %arg4[%c0_3, %c0_4, %c0_5] : memref<2x4x256xbf16, #tpu.memory_space<vmem>>, vector<1x4x256xbf16>
    %6 = vector.shape_cast %5 : vector<1x4x256xbf16> to vector<4x256xbf16>
    %c0_6 = arith.constant 0 : index
    %c0_7 = arith.constant 0 : index
    %c0_8 = arith.constant 0 : index
    %7 = vector.load %arg5[%c0_6, %c0_7, %c0_8] : memref<2x256x256xbf16, #tpu.memory_space<vmem>>, vector<1x256x256xbf16>
    %8 = vector.shape_cast %7 : vector<1x256x256xbf16> to vector<256x256xbf16>
    %cst = arith.constant dense<0.000000e+00> : vector<4x256xf32>
    %9 = tpu.matmul %6, %8, %cst {dimension_numbers = #tpu.dot_dimension_numbers<[1], [0], [0], [1], [0, 0, 1, 1], [], []>} : vector<4x256xbf16>, vector<256x256xbf16>, vector<4x256xf32> -> vector<4x256xf32>
    %10 = arith.addf %4, %9 : vector<4x256xf32>
    %c0_9 = arith.constant 0 : index
    %c0_10 = arith.constant 0 : index
    %c0_11 = arith.constant 0 : index
    %11 = vector.load %arg8[%c0_9, %c0_10, %c0_11] : memref<2x4x256xf32, #tpu.memory_space<vmem>>, vector<1x4x256xf32>
    %12 = vector.shape_cast %11 : vector<1x4x256xf32> to vector<4x256xf32>
    %13 = vector.shape_cast %10 : vector<4x256xf32> to vector<1x4x256xf32>
    tpu.vector_store %arg8[%c0_9, %c0_10, %c0_11], %13 {strides = array<i32>} : memref<2x4x256xf32, #tpu.memory_space<vmem>>, vector<1x4x256xf32>,
    %c1 = arith.constant 1 : index
    %c0_12 = arith.constant 0 : index
    %c0_13 = arith.constant 0 : index
    %14 = vector.load %arg8[%c1, %c0_12, %c0_13] : memref<2x4x256xf32, #tpu.memory_space<vmem>>, vector<1x4x256xf32>
    %15 = vector.shape_cast %14 : vector<1x4x256xf32> to vector<4x256xf32>
    %c1_14 = arith.constant 1 : index
    %c0_15 = arith.constant 0 : index
    %c0_16 = arith.constant 0 : index
    %16 = vector.load %arg4[%c1_14, %c0_15, %c0_16] : memref<2x4x256xbf16, #tpu.memory_space<vmem>>, vector<1x4x256xbf16>
    %17 = vector.shape_cast %16 : vector<1x4x256xbf16> to vector<4x256xbf16>
    %c1_17 = arith.constant 1 : index
    %c0_18 = arith.constant 0 : index
    %c0_19 = arith.constant 0 : index
    %18 = vector.load %arg5[%c1_17, %c0_18, %c0_19] : memref<2x256x256xbf16, #tpu.memory_space<vmem>>, vector<1x256x256xbf16>
    %19 = vector.shape_cast %18 : vector<1x256x256xbf16> to vector<256x256xbf16>
    %cst_20 = arith.constant dense<0.000000e+00> : vector<4x256xf32>
    %20 = tpu.matmul %17, %19, %cst_20 {dimension_numbers = #tpu.dot_dimension_numbers<[1], [0], [0], [1], [0, 0, 1, 1], [], []>} : vector<4x256xbf16>, vector<256x256xbf16>, vector<4x256xf32> -> vector<4x256xf32>
    %21 = arith.addf %15, %20 : vector<4x256xf32>
    %c1_21 = arith.constant 1 : index
    %c0_22 = arith.constant 0 : index
    %c0_23 = arith.constant 0 : index
    %22 = vector.load %arg8[%c1_21, %c0_22, %c0_23] : memref<2x4x256xf32, #tpu.memory_space<vmem>>, vector<1x4x256xf32>
    %23 = vector.shape_cast %22 : vector<1x4x256xf32> to vector<4x256xf32>
    %24 = vector.shape_cast %21 : vector<4x256xf32> to vector<1x4x256xf32>
    tpu.vector_store %arg8[%c1_21, %c0_22, %c0_23], %24 {strides = array<i32>} : memref<2x4x256xf32, #tpu.memory_space<vmem>>, vector<1x4x256xf32>,
    %c0_i32_24 = arith.constant 0 : i32
    %25 = arith.cmpi eq, %arg2, %c0_i32_24 : i32
    %26 = arith.extui %25 : i1 to i32
    %c0_i32_25 = arith.constant 0 : i32
    %27 = arith.cmpi ne, %26, %c0_i32_25 : i32
    scf.if %27 {
      %c0_26 = arith.constant 0 : index
      %28 = memref.load %arg6[%c0_26] : memref<1xf32, #tpu.memory_space<smem>>
      %c0_27 = arith.constant 0 : index
      %c0_28 = arith.constant 0 : index
      %c0_29 = arith.constant 0 : index
      %29 = vector.load %arg8[%c0_27, %c0_28, %c0_29] : memref<2x4x256xf32, #tpu.memory_space<vmem>>, vector<2x4x256xf32>
      %cst_30 = arith.constant 0.000000e+00 : f32
      %cst_31 = arith.constant 1.000000e+00 : f32
      %30 = vector.broadcast %cst_30 : f32 to vector<2x4x256xf32>
      %31 = arith.maximumf %30, %29 : vector<2x4x256xf32>
      %32 = vector.broadcast %cst_31 : f32 to vector<2x4x256xf32>
      %33 = arith.minimumf %32, %31 : vector<2x4x256xf32>
      %cst_32 = arith.constant 1.000000e+00 : f32
      %34 = arith.subf %cst_32, %28 : f32
      %c0_33 = arith.constant 0 : index
      %c0_34 = arith.constant 0 : index
      %c0_35 = arith.constant 0 : index
      %35 = vector.load %arg3[%c0_33, %c0_34, %c0_35] : memref<2x4x256xf32, #tpu.memory_space<vmem>>, vector<2x4x256xf32>
      %36 = vector.broadcast %34 : f32 to vector<2x4x256xf32>
      %37 = arith.mulf %36, %35 : vector<2x4x256xf32>
      %38 = vector.broadcast %28 : f32 to vector<2x4x256xf32>
      %39 = arith.mulf %38, %33 : vector<2x4x256xf32>
      %40 = arith.addf %37, %39 : vector<2x4x256xf32>
      %c0_36 = arith.constant 0 : index
      %c0_37 = arith.constant 0 : index
      %c0_38 = arith.constant 0 : index
      %41 = vector.load %arg7[%c0_36, %c0_37, %c0_38] : memref<2x4x256xf32, #tpu.memory_space<vmem>>, vector<2x4x256xf32>
      tpu.vector_store %arg7[%c0_36, %c0_37, %c0_38], %40 {strides = array<i32>} : memref<2x4x256xf32, #tpu.memory_space<vmem>>, vector<2x4x256xf32>,
    } else {
    }
    return
  }
  func.func @transform_0(%arg0: i32, %arg1: i32, %arg2: i32) -> (i32, i32, i32) {
    %c0_i32 = arith.constant 0 : i32
    %c0_i32_0 = arith.constant 0 : i32
    return %arg0, %c0_i32, %arg1 : i32, i32, i32
  }
  func.func @transform_1(%arg0: i32, %arg1: i32, %arg2: i32) -> (i32, i32, i32) {
    %c0_i32 = arith.constant 0 : i32
    %c0_i32_0 = arith.constant 0 : i32
    return %arg0, %c0_i32, %arg2 : i32, i32, i32
  }
  func.func @transform_2(%arg0: i32, %arg1: i32, %arg2: i32) -> (i32, i32, i32) {
    %c0_i32 = arith.constant 0 : i32
    return %arg0, %arg2, %arg1 : i32, i32, i32
  }
  func.func @transform_3(%arg0: i32, %arg1: i32, %arg2: i32) -> i32 {
    %c0_i32 = arith.constant 0 : i32
    %c0_i32_0 = arith.constant 0 : i32
    return %c0_i32 : i32
  }
  func.func @transform_4(%arg0: i32, %arg1: i32, %arg2: i32) -> (i32, i32, i32) {
    %c0_i32 = arith.constant 0 : i32
    %c0_i32_0 = arith.constant 0 : i32
    return %arg0, %c0_i32, %arg1 : i32, i32, i32
  }
}

</mosaic_0001>

<bundles_post_ra>
// kernel: tpu_custom_call.1
= control target key start
LH: loop header
LB: loop body
LE: loop exit
PB: predicated region body
PF: predicated region fallthrough
CT: control target
= control target key end

     0   :  { %10 = vsyncpa [#allocation5], 0  ;;  %s1129_s0 = inlined_call_operand.hbm [shape: f32[2,4,256], index: 0, kind: input, shape index: {}]   ;;  %s1130_s1 = inlined_call_operand.hbm [shape: bf16[2,4,256], index: 1, kind: input, shape index: {}]   ;;  %s1131_s2 = inlined_call_operand.hbm [shape: bf16[2,256,256], index: 2, kind: input, shape index: {}]   ;;  %s1132_s3 = inlined_call_operand.<no memory space> [shape: f32[1], index: 3, kind: input, shape index: {}]   ;;  %s1133_s4 = inlined_call_operand.hbm [shape: f32[2,4,256], index: 4, kind: output, shape index: {}]  }
   0x1   :  { %11 = vsyncpa [#allocation8], 0  ;;  %s30_s17 = sshll.u32 %s1130_s1, 4  ;;  %s31_s17 = int_to_ptr.hbm [resolvable:$true] %s30_s17 }
   0x2   :  { %12 = vsyncpa [#allocation6], 0  ;;  %s1067_s18 = smov [#allocation7]   ;;  %s17_s22 = sshll.u32 %s1129_s0, 4  ;;  %s18_s22 = int_to_ptr.hbm [resolvable:$true] %s17_s22 }
   0x3   :  { %s32_s19 = sshll.u32 %s1067_s18, 4  ;;  %s1068_s23 = smov 64   ;;  %s33_s19 = int_to_ptr.vmem [resolvable:$true] %s32_s19 }
   0x4   :  { %s1069_s24 = smov 4   ;;  %s1070_s25 = smov [#allocation4]  }
   0x5   :  { %38 = dma.hbm_to_vmem [thread:$0]  %s31_s17, 128, %s33_s19, [#allocation8], %s1068_s23, %s1068_s23, %s1069_s24  }
   0x6   :  { %s19_s26 = sshll.u32 %s1070_s25, 4  ;;  %s1071_s27 = smov 128   ;;  %s20_s26 = int_to_ptr.vmem [resolvable:$true] %s19_s26 }
   0x7   :  { %s1072_s28 = smov 8   ;;  %s43_s30 = sshll.u32 %s1131_s2, 4  ;;  %s44_s30 = int_to_ptr.hbm [resolvable:$true] %s43_s30 }
   0x8   :  { %25 = dma.hbm_to_vmem [thread:$0]  %s18_s22, 256, %s20_s26, [#allocation5], %s1071_s27, %s1071_s27, %s1072_s28  }
   0x9   :  { %s1073_s5 = smov [#allocation9]  }
   0xa   :  { %s45_s0 = sshll.u32 %s1073_s5, 4  ;;  %s46_s0 = int_to_ptr.vmem [resolvable:$true] %s45_s0 }
   0xb   :  { %51 = dma.hbm_to_vmem [thread:$0]  %s44_s30, 8192, %s46_s0, [#allocation8], %s1071_s27, %s1071_s27, %s1072_s28  }
   0xc   :  { %1061 = dma.done.wait [#allocation5], 256  }
   0xd   :  { %1062 = vsyncadd [#allocation5], 4294967040 }
   0xe   :  { %1063 = dma.done.wait [#allocation8], 8320  }
   0xf   :  { %1064 = vsyncadd [#allocation8], 4294958976  ;;  %v695_v0 = vld [vmem:[#allocation9 + $0x70] sm:$0xf]  ;;  %v908_v1 = vld [vmem:[#allocation9 + $0x74] sm:$0xf0] }
  0x10   :  { %v759_v2 = vld [vmem:[#allocation9 + $0xf0] sm:$0xf]  ;;  %v696_v3 = vor.u32 %v908_v1, %v695_v0  ;;  %v924_v4 = vld [vmem:[#allocation9 + $0xf4] sm:$0xf0]  ;;  %v907_v5 = vld [vmem:[#allocation9 + $0x74] sm:$0xf] }
  0x11   :  { %v697_v6 = vld [vmem:[#allocation9 + $0x78] sm:$0xf0]  ;;  %v760_v7 = vor.u32 %v924_v4, %v759_v2  ;;  %v923_v9 = vld [vmem:[#allocation9 + $0xf4] sm:$0xf]  ;;  %v687_v11 = vld [vmem:[#allocation9 + $0x60] sm:$0xf] }
  0x12   :  { %v700_v8 = vor.u32 %v907_v5, %v697_v6  ;;  %v761_v10 = vld [vmem:[#allocation9 + $0xf8] sm:$0xf0]  ;;  %272 = vmatpush.bf16.msra.mxu0 %v696_v3  ;;  %v906_v13 = vld [vmem:[#allocation9 + $0x64] sm:$0xf0]  ;;  %v751_v14 = vld [vmem:[#allocation9 + $0xe0] sm:$0xf] }
  0x13   :  { %v764_v12 = vor.u32 %v923_v9, %v761_v10  ;;  %v922_v15 = vld [vmem:[#allocation9 + $0xe4] sm:$0xf0]  ;;  %285 = vmatpush.bf16.msra.mxu1 %v760_v7  ;;  %v688_v16 = vor.u32 %v906_v13, %v687_v11  ;;  %v905_v18 = vld [vmem:[#allocation9 + $0x64] sm:$0xf]  ;;  %v689_v19 = vld [vmem:[#allocation9 + $0x68] sm:$0xf0] }
  0x14   :  { %298 = vmatpush.bf16.msra.mxu2 %v700_v8  ;;  %v752_v17 = vor.u32 %v922_v15, %v751_v14  ;;  %v921_v20 = vld [vmem:[#allocation9 + $0xe4] sm:$0xf]  ;;  %v692_v21 = vor.u32 %v905_v18, %v689_v19  ;;  %v753_v22 = vld [vmem:[#allocation9 + $0xe8] sm:$0xf0]  ;;  %v679_v23 = vld [vmem:[#allocation9 + $0x50] sm:$0xf] }
  0x15   :  { %311 = vmatpush.bf16.msra.mxu3 %v764_v12  ;;  %v904_v24 = vld [vmem:[#allocation9 + $0x54] sm:$0xf0]  ;;  %v756_v25 = vor.u32 %v921_v20, %v753_v22  ;;  %v743_v26 = vld [vmem:[#allocation9 + $0xd0] sm:$0xf]  ;;  %v903_v28 = vld [vmem:[#allocation9 + $0x54] sm:$0xf] }
  0x16   :  { %v920_v27 = vld [vmem:[#allocation9 + $0xd4] sm:$0xf0]  ;;  %273 = vmatpush.bf16.msra.mxu0 %v688_v16  ;;  %v680_v29 = vor.u32 %v904_v24, %v679_v23  ;;  %v681_v30 = vld [vmem:[#allocation9 + $0x58] sm:$0xf0]  ;;  %v919_v31 = vld [vmem:[#allocation9 + $0xd4] sm:$0xf] }
  0x17   :  { %v745_v32 = vld [vmem:[#allocation9 + $0xd8] sm:$0xf0]  ;;  %286 = vmatpush.bf16.msra.mxu1 %v752_v17  ;;  %v744_v33 = vor.u32 %v920_v27, %v743_v26  ;;  %v684_v34 = vor.u32 %v903_v28, %v681_v30  ;;  %v671_v35 = vld [vmem:[#allocation9 + $0x40] sm:$0xf]  ;;  %v902_v36 = vld [vmem:[#allocation9 + $0x44] sm:$0xf0] }
  0x18   :  { %299 = vmatpush.bf16.msra.mxu2 %v692_v21  ;;  %v735_v37 = vld [vmem:[#allocation9 + $0xc0] sm:$0xf]  ;;  %v748_v38 = vor.u32 %v919_v31, %v745_v32  ;;  %v918_v39 = vld [vmem:[#allocation9 + $0xc4] sm:$0xf0]  ;;  %v901_v40 = vld [vmem:[#allocation9 + $0x44] sm:$0xf]  ;;  %v672_v44 = vor.u32 %v902_v36, %v671_v35 }
  0x19   :  { %312 = vmatpush.bf16.msra.mxu3 %v756_v25  ;;  %v673_v41 = vld [vmem:[#allocation9 + $0x48] sm:$0xf0]  ;;  %v917_v42 = vld [vmem:[#allocation9 + $0xc4] sm:$0xf]  ;;  %v736_v45 = vor.u32 %v918_v39, %v735_v37  ;;  %v663_v47 = vld [vmem:[#allocation9 + $0x30] sm:$0xf] }
  0x1a   :  { %v737_v43 = vld [vmem:[#allocation9 + $0xc8] sm:$0xf0]  ;;  %274 = vmatpush.bf16.msra.mxu0 %v680_v29  ;;  %v676_v46 = vor.u32 %v901_v40, %v673_v41  ;;  %v900_v48 = vld [vmem:[#allocation9 + $0x34] sm:$0xf0]  ;;  %v727_v49 = vld [vmem:[#allocation9 + $0xb0] sm:$0xf] }
  0x1b   :  { %287 = vmatpush.bf16.msra.mxu1 %v744_v33  ;;  %v740_v50 = vor.u32 %v917_v42, %v737_v43  ;;  %v916_v51 = vld [vmem:[#allocation9 + $0xb4] sm:$0xf0]  ;;  %v899_v52 = vld [vmem:[#allocation9 + $0x34] sm:$0xf]  ;;  %v665_v53 = vld [vmem:[#allocation9 + $0x38] sm:$0xf0]  ;;  %v664_v56 = vor.u32 %v900_v48, %v663_v47 }
  0x1c   :  { %300 = vmatpush.bf16.msra.mxu2 %v684_v34  ;;  %v915_v54 = vld [vmem:[#allocation9 + $0xb4] sm:$0xf]  ;;  %v729_v55 = vld [vmem:[#allocation9 + $0xb8] sm:$0xf0]  ;;  %v728_v57 = vor.u32 %v916_v51, %v727_v49  ;;  %v668_v58 = vor.u32 %v899_v52, %v665_v53  ;;  %v655_v59 = vld [vmem:[#allocation9 + $0x20] sm:$0xf] }
  0x1d   :  { %313 = vmatpush.bf16.msra.mxu3 %v748_v38  ;;  %v898_v60 = vld [vmem:[#allocation9 + $0x24] sm:$0xf0]  ;;  %v719_v61 = vld [vmem:[#allocation9 + $0xa0] sm:$0xf]  ;;  %v732_v62 = vor.u32 %v915_v54, %v729_v55  ;;  %v897_v0 = vld [vmem:[#allocation9 + $0x24] sm:$0xf] }
  0x1e   :  { %275 = vmatpush.bf16.msra.mxu0 %v672_v44  ;;  %v914_v63 = vld [vmem:[#allocation9 + $0xa4] sm:$0xf0]  ;;  %v657_v1 = vld [vmem:[#allocation9 + $0x28] sm:$0xf0]  ;;  %v913_v2 = vld [vmem:[#allocation9 + $0xa4] sm:$0xf]  ;;  %v656_v4 = vor.u32 %v898_v60, %v655_v59 }
  0x1f   :  { %288 = vmatpush.bf16.msra.mxu1 %v736_v45  ;;  %v721_v3 = vld [vmem:[#allocation9 + $0xa8] sm:$0xf0]  ;;  %v720_v5 = vor.u32 %v914_v63, %v719_v61  ;;  %v660_v6 = vor.u32 %v897_v0, %v657_v1  ;;  %v647_v7 = vld [vmem:[#allocation9 + $0x10] sm:$0xf]  ;;  %v896_v8 = vld [vmem:[#allocation9 + $0x14] sm:$0xf0] }
  0x20   :  { %301 = vmatpush.bf16.msra.mxu2 %v676_v46  ;;  %v711_v9 = vld [vmem:[#allocation9 + $0x90] sm:$0xf]  ;;  %v724_v10 = vor.u32 %v913_v2, %v721_v3  ;;  %v912_v11 = vld [vmem:[#allocation9 + $0x94] sm:$0xf0]  ;;  %v895_v12 = vld [vmem:[#allocation9 + $0x14] sm:$0xf]  ;;  %v648_v17 = vor.u32 %v896_v8, %v647_v7 }
  0x21   :  { %314 = vmatpush.bf16.msra.mxu3 %v740_v50  ;;  %v649_v13 = vld [vmem:[#allocation9 + $0x18] sm:$0xf0]  ;;  %v911_v14 = vld [vmem:[#allocation9 + $0x94] sm:$0xf]  ;;  %v639_v16 = vld [vmem:[#allocation9] sm:$0xf]  ;;  %v712_v21 = vor.u32 %v912_v11, %v711_v9 }
  0x22   :  { %276 = vmatpush.bf16.msra.mxu0 %v664_v56  ;;  %v713_v15 = vld [vmem:[#allocation9 + $0x98] sm:$0xf0]  ;;  %v894_v18 = vld [vmem:[#allocation9 + $0x4] sm:$0xf0]  ;;  %v703_v19 = vld [vmem:[#allocation9 + $0x80] sm:$0xf]  ;;  %v652_v22 = vor.u32 %v895_v12, %v649_v13 }
  0x23   :  { %289 = vmatpush.bf16.msra.mxu1 %v728_v57  ;;  %v910_v20 = vld [vmem:[#allocation9 + $0x84] sm:$0xf0]  ;;  %v893_v23 = vld [vmem:[#allocation9 + $0x4] sm:$0xf]  ;;  %v641_v24 = vld [vmem:[#allocation9 + $0x8] sm:$0xf0]  ;;  %v716_v26 = vor.u32 %v911_v14, %v713_v15  ;;  %v640_v33 = vor.u32 %v894_v18, %v639_v16 }
  0x24   :  { %302 = vmatpush.bf16.msra.mxu2 %v668_v58  ;;  %v909_v25 = vld [vmem:[#allocation9 + $0x84] sm:$0xf]  ;;  %v705_v27 = vld [vmem:[#allocation9 + $0x88] sm:$0xf0]  ;;  %v823_v28 = vld [vmem:[#allocation9 + $0x170] sm:$0xf]  ;;  %v704_v36 = vor.u32 %v910_v20, %v703_v19  ;;  %v644_v37 = vor.u32 %v893_v23, %v641_v24 }
  0x25   :  { %315 = vmatpush.bf16.msra.mxu3 %v732_v62  ;;  %v940_v29 = vld [vmem:[#allocation9 + $0x174] sm:$0xf0]  ;;  %v887_v30 = vld [vmem:[#allocation9 + $0x1f0] sm:$0xf]  ;;  %v939_v34 = vld [vmem:[#allocation9 + $0x174] sm:$0xf]  ;;  %v708_v40 = vor.u32 %v909_v25, %v705_v27 }
  0x26   :  { %277 = vmatpush.bf16.msra.mxu0 %v656_v4  ;;  %v956_v31 = vld [vmem:[#allocation9 + $0x1f4] sm:$0xf0]  ;;  %v825_v35 = vld [vmem:[#allocation9 + $0x178] sm:$0xf0]  ;;  %v955_v38 = vld [vmem:[#allocation9 + $0x1f4] sm:$0xf]  ;;  %v824_v41 = vor.u32 %v940_v29, %v823_v28 }
  0x27   :  { %290 = vmatpush.bf16.msra.mxu1 %v720_v5  ;;  %v73_v32 = vld [vmem:[#allocation7] sm:$0xf]  ;;  %v889_v39 = vld [vmem:[#allocation9 + $0x1f8] sm:$0xf0]  ;;  %v815_v42 = vld [vmem:[#allocation9 + $0x160] sm:$0xf]  ;;  %v888_v43 = vor.u32 %v956_v31, %v887_v30  ;;  %v828_v44 = vor.u32 %v939_v34, %v825_v35 }
  0x28   :  { %303 = vmatpush.bf16.msra.mxu2 %v660_v6  ;;  %107 = vst [vmem:[#allocation1] ss:$4 sm:$0xff] %v73_v32  ;;  %v938_v45 = vld [vmem:[#allocation9 + $0x164] sm:$0xf0]  ;;  %v879_v46 = vld [vmem:[#allocation9 + $0x1e0] sm:$0xf]  ;;  %v892_v48 = vor.u32 %v955_v38, %v889_v39 }
  0x29   :  { %316 = vmatpush.bf16.msra.mxu3 %v724_v10  ;;  %v954_v47 = vld [vmem:[#allocation9 + $0x1e4] sm:$0xf0]  ;;  %v937_v49 = vld [vmem:[#allocation9 + $0x164] sm:$0xf]  ;;  %v817_v50 = vld [vmem:[#allocation9 + $0x168] sm:$0xf0]  ;;  %v816_v55 = vor.u32 %v938_v45, %v815_v42 }
  0x2a   :  { %278 = vmatpush.bf16.msra.mxu0 %v648_v17  ;;  %v953_v51 = vld [vmem:[#allocation9 + $0x1e4] sm:$0xf]  ;;  %v881_v52 = vld [vmem:[#allocation9 + $0x1e8] sm:$0xf0]  ;;  %v335_v53 = vld [vmem:[#allocation7 + $0x4] sm:$0xf]  ;;  %v880_v59 = vor.u32 %v954_v47, %v879_v46  ;;  %v820_v60 = vor.u32 %v937_v49, %v817_v50 }
  0x2b   :  { %291 = vmatpush.bf16.msra.mxu1 %v712_v21  ;;  %v807_v54 = vld [vmem:[#allocation9 + $0x150] sm:$0xf]  ;;  %v936_v56 = vld [vmem:[#allocation9 + $0x154] sm:$0xf0]  ;;  %v884_v63 = vor.u32 %v953_v51, %v881_v52  ;;  %v935_v0 = vld [vmem:[#allocation9 + $0x154] sm:$0xf] }
  0x2c   :  { %304 = vmatpush.bf16.msra.mxu2 %v652_v22  ;;  %v871_v57 = vld [vmem:[#allocation9 + $0x1d0] sm:$0xf]  ;;  %v952_v58 = vld [vmem:[#allocation9 + $0x1d4] sm:$0xf0]  ;;  %v809_v1 = vld [vmem:[#allocation9 + $0x158] sm:$0xf0]  ;;  %v808_v4 = vor.u32 %v936_v56, %v807_v54 }
  0x2d   :  { %317 = vmatpush.bf16.msra.mxu3 %v716_v26  ;;  %v951_v2 = vld [vmem:[#allocation9 + $0x1d4] sm:$0xf]  ;;  %v873_v3 = vld [vmem:[#allocation9 + $0x1d8] sm:$0xf0]  ;;  %v872_v5 = vor.u32 %v952_v58, %v871_v57  ;;  %v812_v6 = vor.u32 %v935_v0, %v809_v1  ;;  %v799_v7 = vld [vmem:[#allocation9 + $0x140] sm:$0xf] }
  0x2e   :  { %279 = vmatpush.bf16.msra.mxu0 %v640_v33  ;;  %v934_v8 = vld [vmem:[#allocation9 + $0x144] sm:$0xf0]  ;;  %v863_v9 = vld [vmem:[#allocation9 + $0x1c0] sm:$0xf]  ;;  %v876_v10 = vor.u32 %v951_v2, %v873_v3  ;;  %v933_v12 = vld [vmem:[#allocation9 + $0x144] sm:$0xf] }
  0x2f   :  { %292 = vmatpush.bf16.msra.mxu1 %v704_v36  ;;  %v108_v61 = vld.sshfl [vmem:[#allocation1] sm:$0xff pattern:$0x73625140]  ;;  %v109_v62 = vld.sshfl [vmem:[#allocation1 + $0x8] sm:$0xff pattern:$0x73625140]  ;;  %v800_v16 = vor.u32 %v934_v8, %v799_v7 }
  0x30   :  { %305 = vmatpush.bf16.msra.mxu2 %v644_v37  ;;  %370 = vst [vmem:[#allocation1] ss:$4 sm:$0xff] %v335_v53  ;;  %v950_v11 = vld [vmem:[#allocation9 + $0x1c4] sm:$0xf0]  ;;  %v801_v13 = vld [vmem:[#allocation9 + $0x148] sm:$0xf0] }
  0x31   :  { %318 = vmatpush.bf16.msra.mxu3 %v708_v40  ;;  %280 = vmatmul.bf16.vlgmr.msra.gmra.mxu0 %v108_v61  ;;  %v949_v14 = vld [vmem:[#allocation9 + $0x1c4] sm:$0xf]  ;;  %v865_v15 = vld [vmem:[#allocation9 + $0x1c8] sm:$0xf0]  ;;  %v864_v17 = vor.u32 %v950_v11, %v863_v9  ;;  %v804_v18 = vor.u32 %v933_v12, %v801_v13  ;;  %v791_v19 = vld [vmem:[#allocation9 + $0x130] sm:$0xf] }
  0x32   :  { %535 = vmatpush.bf16.msrb.mxu0 %v824_v41  ;;  %293 = vmatmul.bf16.vlgmr.msra.gmra.mxu1 %v109_v62  ;;  %v932_v20 = vld [vmem:[#allocation9 + $0x134] sm:$0xf0]  ;;  %v855_v21 = vld [vmem:[#allocation9 + $0x1b0] sm:$0xf]  ;;  %v868_v22 = vor.u32 %v949_v14, %v865_v15  ;;  %v931_v24 = vld [vmem:[#allocation9 + $0x134] sm:$0xf] }
  0x33   :  { %548 = vmatpush.bf16.msrb.mxu1 %v888_v43  ;;  %306 = vmatmul.bf16.vlgmr.msra.gmra.mxu2 %v108_v61  ;;  %v948_v23 = vld [vmem:[#allocation9 + $0x1b4] sm:$0xf0]  ;;  %v793_v25 = vld [vmem:[#allocation9 + $0x138] sm:$0xf0]  ;;  %v947_v26 = vld [vmem:[#allocation9 + $0x1b4] sm:$0xf]  ;;  %v792_v28 = vor.u32 %v932_v20, %v791_v19  ;;  %v610_v19 = vstv %s1132_s3 }
  0x34   :  { %561 = vmatpush.bf16.msrb.mxu2 %v828_v44  ;;  %319 = vmatmul.bf16.vlgmr.msra.gmra.mxu3 %v109_v62  ;;  %v857_v27 = vld [vmem:[#allocation9 + $0x1b8] sm:$0xf0]  ;;  %v856_v29 = vor.u32 %v948_v23, %v855_v21  ;;  %v796_v30 = vor.u32 %v931_v24, %v793_v25  ;;  %v783_v31 = vld [vmem:[#allocation9 + $0x120] sm:$0xf]  ;;  %v930_v32 = vld [vmem:[#allocation9 + $0x124] sm:$0xf0] }
  0x35   :  { %574 = vmatpush.bf16.msrb.mxu3 %v892_v48  ;;  %v847_v33 = vld [vmem:[#allocation9 + $0x1a0] sm:$0xf]  ;;  %v860_v34 = vor.u32 %v947_v26, %v857_v27  ;;  %v946_v35 = vld [vmem:[#allocation9 + $0x1a4] sm:$0xf0]  ;;  %v929_v36 = vld [vmem:[#allocation9 + $0x124] sm:$0xf]  ;;  %v784_v40 = vor.u32 %v930_v32, %v783_v31 }
  0x36   :  { %536 = vmatpush.bf16.msrb.mxu0 %v816_v55  ;;  %v785_v37 = vld [vmem:[#allocation9 + $0x128] sm:$0xf0]  ;;  %v945_v38 = vld [vmem:[#allocation9 + $0x1a4] sm:$0xf]  ;;  %v848_v41 = vor.u32 %v946_v35, %v847_v33  ;;  %v775_v43 = vld [vmem:[#allocation9 + $0x110] sm:$0xf] }
  0x37   :  { %549 = vmatpush.bf16.msrb.mxu1 %v880_v59  ;;  %v849_v39 = vld [vmem:[#allocation9 + $0x1a8] sm:$0xf0]  ;;  %v788_v42 = vor.u32 %v929_v36, %v785_v37  ;;  %v928_v44 = vld [vmem:[#allocation9 + $0x114] sm:$0xf0]  ;;  %v839_v45 = vld [vmem:[#allocation9 + $0x190] sm:$0xf] }
  0x38   :  { %562 = vmatpush.bf16.msrb.mxu2 %v820_v60  ;;  %v852_v46 = vor.u32 %v945_v38, %v849_v39  ;;  %v944_v47 = vld [vmem:[#allocation9 + $0x194] sm:$0xf0]  ;;  %v927_v48 = vld [vmem:[#allocation9 + $0x114] sm:$0xf]  ;;  %v777_v49 = vld [vmem:[#allocation9 + $0x118] sm:$0xf0]  ;;  %v776_v52 = vor.u32 %v928_v44, %v775_v43 }
  0x39   :  { %575 = vmatpush.bf16.msrb.mxu3 %v884_v63  ;;  %v943_v50 = vld [vmem:[#allocation9 + $0x194] sm:$0xf]  ;;  %v841_v51 = vld [vmem:[#allocation9 + $0x198] sm:$0xf0]  ;;  %v840_v53 = vor.u32 %v944_v47, %v839_v45  ;;  %v780_v54 = vor.u32 %v927_v48, %v777_v49  ;;  %v767_v55 = vld [vmem:[#allocation9 + $0x100] sm:$0xf] }
  0x3a   :  { %537 = vmatpush.bf16.msrb.mxu0 %v808_v4  ;;  %v926_v56 = vld [vmem:[#allocation9 + $0x104] sm:$0xf0]  ;;  %v831_v57 = vld [vmem:[#allocation9 + $0x180] sm:$0xf]  ;;  %v844_v58 = vor.u32 %v943_v50, %v841_v51  ;;  %v925_v60 = vld [vmem:[#allocation9 + $0x104] sm:$0xf] }
  0x3b   :  { %550 = vmatpush.bf16.msrb.mxu1 %v872_v5  ;;  %v942_v59 = vld [vmem:[#allocation9 + $0x184] sm:$0xf0]  ;;  %v769_v61 = vld [vmem:[#allocation9 + $0x108] sm:$0xf0]  ;;  %v941_v62 = vld [vmem:[#allocation9 + $0x184] sm:$0xf]  ;;  %v768_v0 = vor.u32 %v926_v56, %v767_v55 }
  0x3c   :  { %563 = vmatpush.bf16.msrb.mxu2 %v812_v6  ;;  %v833_v63 = vld [vmem:[#allocation9 + $0x188] sm:$0xf0]  ;;  %v832_v1 = vor.u32 %v942_v59, %v831_v57  ;;  %v772_v2 = vor.u32 %v925_v60, %v769_v61  ;;  %v371_v4 = vld.sshfl [vmem:[#allocation1] sm:$0xff pattern:$0x73625140]  ;;  %s604_s7 = ssub.f32 1.0, %s1132_s3 }
  0x3d   :  { %576 = vmatpush.bf16.msrb.mxu3 %v876_v10  ;;  %v836_v3 = vor.u32 %v941_v62, %v833_v63  ;;  %v372_v5 = vld.sshfl [vmem:[#allocation1 + $0x8] sm:$0xff pattern:$0x73625140]  ;;  %vm327_vm0 = vcmask 1043456   ;;  %v606_v36 = vld [vmem:[#allocation4 + $0x8] sm:$0xff]  ;;  %s1074_s3 = smov [#allocation10]  }
  0x3e   :  { %538 = vmatpush.bf16.msrb.mxu0 %v800_v16  ;;  %v605_v16 = vld [vmem:[#allocation4] sm:$0xff]  ;;  %s621_s10 = sshll.u32 %s1074_s3, 4  ;;  %s623_s13 = sshll.u32 %s1133_s4, 4  ;;  %s622_s10 = int_to_ptr.vmem [resolvable:$true] %s621_s10  ;;  %s624_s13 = int_to_ptr.hbm [resolvable:$true] %s623_s13 }
  0x3f   :  { %551 = vmatpush.bf16.msrb.mxu1 %v864_v17  ;;  %v607_v17 = vstv %s604_s7 }
  0x40   :  { %564 = vmatpush.bf16.msrb.mxu2 %v804_v18  ;;  %v608_v23 = vmul.f32 %v607_v17, %v605_v16 }
  0x41   :  { %577 = vmatpush.bf16.msrb.mxu3 %v868_v22 }
  0x42   :  { %539 = vmatpush.bf16.msrb.mxu0 %v792_v28 }
  0x43   :  { %552 = vmatpush.bf16.msrb.mxu1 %v856_v29 }
  0x44   :  { %565 = vmatpush.bf16.msrb.mxu2 %v796_v30 }
  0x45   :  { %578 = vmatpush.bf16.msrb.mxu3 %v860_v34 }
  0x46   :  { %540 = vmatpush.bf16.msrb.mxu0 %v784_v40 }
  0x47   :  { %553 = vmatpush.bf16.msrb.mxu1 %v848_v41  ;;  %v609_v41 = vmul.f32 %v607_v17, %v606_v36 }
  0x48   :  { %566 = vmatpush.bf16.msrb.mxu2 %v788_v42 }
  0x49   :  { %579 = vmatpush.bf16.msrb.mxu3 %v852_v46 }
  0x4a   :  { %541 = vmatpush.bf16.msrb.mxu0 %v776_v52 }
  0x4b   :  { %554 = vmatpush.bf16.msrb.mxu1 %v840_v53 }
  0x4c   :  { %567 = vmatpush.bf16.msrb.mxu2 %v780_v54 }
  0x4d   :  { %580 = vmatpush.bf16.msrb.mxu3 %v844_v58 }
  0x4e   :  { %542 = vmatpush.bf16.msrb.mxu0 %v768_v0 }
  0x4f   :  { %555 = vmatpush.bf16.msrb.mxu1 %v832_v1 }
  0x50   :  { %568 = vmatpush.bf16.msrb.mxu2 %v772_v2 }
  0x51   :  { %581 = vmatpush.bf16.msrb.mxu3 %v836_v3  ;;  %543 = vmatmul.bf16.vlgmr.msrb.gmra.mxu0 %v371_v4 }
  0x52   :  { %556 = vmatmul.bf16.vlgmr.msrb.gmra.mxu1 %v372_v5 }
  0x53   :  { %569 = vmatmul.bf16.vlgmr.msrb.gmra.mxu2 %v371_v4 }
  0x54   :  { %582 = vmatmul.bf16.vlgmr.msrb.gmra.mxu3 %v372_v5 }
  0xae   :  { %v281_v6 = vpop.f32.mrf.mxu0 }
  0xaf   :  { %v294_v7 = vpop.f32.mrf.mxu1 }
  0xb0   :  { %v295_v11 = vadd.f32 %v294_v7, %v281_v6 }
  0xb6   :  { %v307_v8 = vpop.f32.mrf.mxu2  ;;  %v283_v12 = vpop.f32.mrf.mxu0 }
  0xb7   :  { %v320_v9 = vpop.f32.mrf.mxu3  ;;  %v296_v14 = vpop.f32.mrf.mxu1 }
  0xb8   :  { %v321_v10 = vadd.f32 %v320_v9, %v307_v8 }
  0xba   :  { %v326_v13 = vrot.slane %v321_v10, 4 }
  0xbc   :  { %v328_v15 = vsel %vm327_vm0, %v295_v11, %v326_v13 }
  0xbd   :  { %v600_v18 = vmax.f32 %v328_v15, 0.0 }
  0xbe   :  { %v309_v20 = vpop.f32.mrf.mxu2 }
  0xbf   :  { %v602_v21 = vmin.f32 %v600_v18, 1.0  ;;  %v322_v22 = vpop.f32.mrf.mxu3 }
  0xc1   :  { %v611_v24 = vmul.f32 %v610_v19, %v602_v21 }
  0xc3   :  { %v613_v25 = vadd.f32 %v611_v24, %v608_v23 }
  0xc5   :  { %615 = vst [vmem:[#allocation10] sm:$0xff] %v613_v25 }
  0xce   :  { %v544_v26 = vpop.f32.mrf.mxu0 }
  0xcf   :  { %v557_v27 = vpop.f32.mrf.mxu1 }
  0xd0   :  { %v558_v31 = vadd.f32 %v557_v27, %v544_v26 }
  0xd6   :  { %v570_v28 = vpop.f32.mrf.mxu2  ;;  %v546_v30 = vpop.f32.mrf.mxu0 }
  0xd7   :  { %v583_v29 = vpop.f32.mrf.mxu3  ;;  %v559_v33 = vpop.f32.mrf.mxu1 }
  0xd8   :  { %v584_v32 = vadd.f32 %v583_v29, %v570_v28 }
  0xda   :  { %v589_v34 = vrot.slane %v584_v32, 4 }
  0xdc   :  { %v590_v35 = vsel %vm327_vm0, %v558_v31, %v589_v34 }
  0xdd   :  { %v601_v37 = vmax.f32 %v590_v35, 0.0 }
  0xde   :  { %v572_v38 = vpop.f32.mrf.mxu2 }
  0xdf   :  { %v603_v39 = vmin.f32 %v601_v37, 1.0  ;;  %v585_v40 = vpop.f32.mrf.mxu3 }
  0xe1   :  { %v612_v42 = vmul.f32 %v610_v19, %v603_v39 }
  0xe3   :  { %v614_v43 = vadd.f32 %v612_v42, %v609_v41 }
  0xe5   :  { %616 = vst [vmem:[#allocation10 + $0x8] sm:$0xff] %v614_v43 }
  0xe6   :  { %629 = dma.vmem_to_hbm [thread:$0]  %s622_s10, 256, %s624_s13, [#allocation6], %s1071_s27, %s1071_s27, %s1072_s28  }
  0xe7   :  { %1065 = dma.done.wait [#allocation6], 256  }
  0xe8   :  { %1066 = vsyncadd [#allocation6], 4294967040 }
  0xe9   :  { %634 = vsyncpa [#allocation5], 1 }
  0xea   :  { %635 = vsyncpa [#allocation8], 1 }
  0xeb   :  { %636 = vsyncpa [#allocation6], 1 }

</bundles_post_ra>
